<compile_context>
chip_gen: v6e
topology: v6e:2x2x1
jax: 0.10.0
libtpu: 0.0.40
codegen_flags: <defaults>
</compile_context>

<pallas_src>
import functools

import jax
import jax.numpy as jnp
from jax import lax
from jax.experimental import pallas as pl
from jax.experimental.pallas import tpu as pltpu

EPS = 1e-6
_VMEM_LIMIT = 32 * 1024 * 1024      # safe scoped limit on v5e/v6e (128 MiB) and v7x (64 MiB)
_TILE_BYTES_CAP = 4 * 1024 * 1024   # per-buffer tile cap: 2 bufs x 3 streams x 4 MiB < 32 MiB


def _sublane_pack(dtype):
    # sublane packing: 8 rows for 4-byte, 16 for 2-byte, 32 for 1-byte dtypes
    return {4: 8, 2: 16, 1: 32}.get(jnp.dtype(dtype).itemsize, 8)


def _pick_row_tile(total_rows, pack, max_rows):
    """Largest divisor of total_rows that is a multiple of `pack`
    (or equals total_rows, which is always a legal block) and <= max_rows."""
    upper = min(total_rows, max(1, max_rows))
    for cand in range(upper, 0, -1):
        if total_rows % cand == 0 and (cand % pack == 0 or cand == total_rows):
            return cand
    return total_rows


# ---------------------------------------------------------------------------
# Kernel 1: LayerNormalization  (row-wise reduction over the hidden dim)
# ---------------------------------------------------------------------------
def _layernorm_kernel(alpha_ref, bias_ref, x_ref, o_ref):
    x = x_ref[...].astype(jnp.float32)            # (row_tile, D), f32 accumulation
    d = x.shape[-1]
    mean = jnp.mean(x, axis=-1, keepdims=True)
    diff = x - mean
    # torch.std default: unbiased (divide by D-1); eps is added to std, not var.
    var = jnp.sum(diff * diff, axis=-1, keepdims=True) / jnp.float32(d - 1)
    inv = 1.0 / (jnp.sqrt(var) + jnp.float32(EPS))
    y = alpha_ref[0] * diff * inv + bias_ref[0]
    o_ref[...] = y.astype(o_ref.dtype)


def layernorm(x, alpha, bias, *, row_tile=None):
    orig_shape = x.shape
    D = orig_shape[-1]
    R = x.size // D
    x2 = x.reshape(R, D)

    itemsize = jnp.dtype(x.dtype).itemsize
    pack = _sublane_pack(x.dtype)
    if row_tile is None:
        max_rows = min(2048, max(1, _TILE_BYTES_CAP // (D * itemsize)))
        row_tile = _pick_row_tile(R, pack, max_rows)
    assert R % row_tile == 0

    out = pl.pallas_call(
        _layernorm_kernel,
        out_shape=jax.ShapeDtypeStruct((R, D), x.dtype),
        grid=(R // row_tile,),
        in_specs=[
            pl.BlockSpec(memory_space=pltpu.MemorySpace.SMEM),   # alpha (1,)
            pl.BlockSpec(memory_space=pltpu.MemorySpace.SMEM),   # bias  (1,)
            pl.BlockSpec((row_tile, D), lambda i: (i, 0)),
        ],
        out_specs=pl.BlockSpec((row_tile, D), lambda i: (i, 0)),
        compiler_params=pltpu.CompilerParams(
            dimension_semantics=("parallel",),
            vmem_limit_bytes=_VMEM_LIMIT,
        ),
    )(alpha, bias, x2)
    return out.reshape(orig_shape)


# ---------------------------------------------------------------------------
# Kernel 2: dropout(sublayer_out) + residual add  (elementwise, lane-dense)
# ---------------------------------------------------------------------------
def _hash_u32(x):
    # splitmix32-style finalizer (bijective on uint32)
    x = x ^ (x >> 16)
    x = x * jnp.uint32(0x7FEB352D)
    x = x ^ (x >> 15)
    x = x * jnp.uint32(0x846CA68B)
    x = x ^ (x >> 16)
    return x


def _dropout_residual_kernel(p, seed_ref, x_ref, s_ref, o_ref):
    x = x_ref[...]                       # keep input dtype (bf16 stays bf16)
    s = s_ref[...]
    if p > 0.0:
        rt, L = s.shape
        # counter-based stateless PRNG: hash(global element index ^ mixed seed)
        seed = seed_ref[0].astype(jnp.uint32) * jnp.uint32(0x9E3779B9)
        row = lax.broadcasted_iota(jnp.int32, (rt, L), 0).astype(jnp.uint32)
        col = lax.broadcasted_iota(jnp.int32, (rt, L), 1).astype(jnp.uint32)
        base = (pl.program_id(0) * rt).astype(jnp.uint32)
        counter = (base + row) * jnp.uint32(L) + col
        bits = _hash_u32(counter ^ seed)
        # integer-domain threshold: drop when bits < round(p * 2^32)
        thresh = jnp.uint32(min(int(round(p * 2.0 ** 32)), 2 ** 32 - 1))
        keep = bits >= thresh
        scale = jnp.asarray(1.0 / (1.0 - p), dtype=s.dtype)
        s = jnp.where(keep, s * scale, jnp.zeros((), dtype=s.dtype))
    o_ref[...] = (x + s).astype(o_ref.dtype)


def dropout_residual(x, sub_out, *, p, seed, lane_width_cap=8192):
    orig_shape = x.shape
    N = x.size
    itemsize = jnp.dtype(x.dtype).itemsize
    pack = _sublane_pack(x.dtype)
    sub_out = sub_out.astype(x.dtype)

    # Lane-dense flattening: op is purely elementwise, so reshape freely so the
    # last (lane) dim is a large multiple of 128 -> unmasked full-width stores.
    lane_w = None
    upper = min(N, lane_width_cap)
    upper -= upper % 128
    for cand in range(upper, 0, -128):
        if N % cand == 0:
            lane_w = cand
            break
    if lane_w is None:
        lane_w = orig_shape[-1]          # fallback: natural (rows, hidden) layout
    rows = N // lane_w

    x2 = x.reshape(rows, lane_w)
    s2 = sub_out.reshape(rows, lane_w)

    max_rows = min(2048, max(1, _TILE_BYTES_CAP // (lane_w * itemsize)))
    row_tile = _pick_row_tile(rows, pack, max_rows)
    assert rows % row_tile == 0

    seed_arr = jnp.asarray([seed], dtype=jnp.int32)
    out = pl.pallas_call(
        functools.partial(_dropout_residual_kernel, float(p)),
        out_shape=jax.ShapeDtypeStruct((rows, lane_w), x.dtype),
        grid=(rows // row_tile,),
        in_specs=[
            pl.BlockSpec(memory_space=pltpu.MemorySpace.SMEM),     # seed (1,) int32
            pl.BlockSpec((row_tile, lane_w), lambda i: (i, 0)),    # x (residual)
            pl.BlockSpec((row_tile, lane_w), lambda i: (i, 0)),    # sublayer output
        ],
        out_specs=pl.BlockSpec((row_tile, lane_w), lambda i: (i, 0)),
        compiler_params=pltpu.CompilerParams(
            dimension_semantics=("parallel",),
            vmem_limit_bytes=_VMEM_LIMIT,
        ),
    )(seed_arr, x2, s2)
    return out.reshape(orig_shape)


# ---------------------------------------------------------------------------
# ResidualConnection.forward(x, sublayer) == x + dropout(sublayer(norm(x)))
# ---------------------------------------------------------------------------
# TODO(synk): when the sublayer is a known Pallas matmul, fuse dropout+residual
# into its epilogue to save one full HBM round trip (here it is a black box).
def residual_connection(x, sublayer, *, alpha, bias, dropout_p, seed):
    y = layernorm(x, alpha, bias)
    s = sublayer(y)
    return dropout_residual(x, s, p=dropout_p, seed=seed)


# ---------------------------------------------------------------------------
# Pure-JAX reference (dropout disabled) for the correctness check.
# ---------------------------------------------------------------------------
def _ref_forward(x, sublayer, alpha, bias):
    mean = jnp.mean(x, axis=-1, keepdims=True)
    std = jnp.std(x, axis=-1, ddof=1, keepdims=True)
    y = alpha[0] * (x - mean) / (std + EPS) + bias[0]
    return x + sublayer(y)


if __name__ == "__main__":
    B, S, D = 2, 8, 32
    key = jax.random.PRNGKey(0)
    kx, kw, kb = jax.random.split(key, 3)

    x = jax.random.normal(kx, (B, S, D), dtype=jnp.float32)

    # LayerNormalization parameters: alpha = ones(1), bias = zeros(1)
    alpha = jnp.ones((1,), dtype=jnp.float32)
    bias = jnp.zeros((1,), dtype=jnp.float32)

    # Deterministic example sublayer (a small linear), applied as plain JAX —
    # the sublayer is external to the ResidualConnection module.
    W = jax.random.normal(kw, (D, D), dtype=jnp.float32) * 0.05
    b = jax.random.normal(kb, (D,), dtype=jnp.float32) * 0.01
    sublayer = lambda t: jnp.dot(t, W) + b

    # 1) dropout_p = 0.0 : deterministic path, verify against pure-JAX reference
    out0 = residual_connection(x, sublayer, alpha=alpha, bias=bias,
                               dropout_p=0.0, seed=0)
    out0 = jax.block_until_ready(out0)
    ref0 = _ref_forward(x, sublayer, alpha, bias)
    assert out0.shape == (B, S, D) and out0.dtype == x.dtype
    assert jnp.allclose(out0, ref0, atol=1e-5, rtol=1e-5), "mismatch vs reference"

    # 2) dropout_p = 0.1 : exercises the in-kernel counter-hash dropout
    out1 = residual_connection(x, sublayer, alpha=alpha, bias=bias,
                               dropout_p=0.1, seed=1234)
    out1 = jax.block_until_ready(out1)
    assert out1.shape == (B, S, D)
    # where an element is dropped, out == x exactly (x + 0); roughly p fraction
    drop_frac = float(jnp.mean((out1 == x).astype(jnp.float32)))
    assert 0.0 < drop_frac < 0.5, f"dropout fraction looks wrong: {drop_frac}"

    print("KERNEL_OK")
</pallas_src>

<mosaic_0001>
module attributes {stable_mosaic.version = 11 : i64} {
  func.func @_layernorm_kernel(%arg0: i32, %arg1: memref<1xf32, #tpu.memory_space<smem>>, %arg2: memref<1xf32, #tpu.memory_space<smem>>, %arg3: memref<16x32xf32, #tpu.memory_space<vmem>>, %arg4: memref<16x32xf32, #tpu.memory_space<vmem>>) attributes {dimension_semantics = [#tpu.dimension_semantics<parallel>], iteration_bounds = array<i64: 1>, scalar_prefetch = 0 : i64, scratch_operands = 0 : i64, tpu.core_type = #tpu.core_type<tc>, window_params = [{transform_indices = @transform_0, window_bounds = array<i64: 1>}, {transform_indices = @transform_1, window_bounds = array<i64: 1>}, {transform_indices = @transform_2, window_bounds = array<i64: 16, 32>}, {transform_indices = @transform_3, window_bounds = array<i64: 16, 32>}]} {
    %c0 = arith.constant 0 : index
    %c0_0 = arith.constant 0 : index
    %0 = vector.load %arg3[%c0, %c0_0] : memref<16x32xf32, #tpu.memory_space<vmem>>, vector<16x32xf32>
    %cst = arith.constant dense<0.000000e+00> : vector<16xf32>
    %1 = vector.multi_reduction <add>, %0, %cst [1] : vector<16x32xf32> to vector<16xf32>
    %2 = vector.shape_cast %1 : vector<16xf32> to vector<16x1xf32>
    %cst_1 = arith.constant 3.200000e+01 : f32
    %3 = vector.broadcast %cst_1 : f32 to vector<16x1xf32>
    %4 = arith.divf %2, %3 : vector<16x1xf32>
    %5 = vector.broadcast %4 : vector<16x1xf32> to vector<16x32xf32>
    %6 = arith.subf %0, %5 : vector<16x32xf32>
    %7 = arith.mulf %6, %6 : vector<16x32xf32>
    %cst_2 = arith.constant dense<0.000000e+00> : vector<16xf32>
    %8 = vector.multi_reduction <add>, %7, %cst_2 [1] : vector<16x32xf32> to vector<16xf32>
    %9 = vector.shape_cast %8 : vector<16xf32> to vector<16x1xf32>
    %cst_3 = arith.constant 3.100000e+01 : f32
    %10 = vector.broadcast %cst_3 : f32 to vector<16x1xf32>
    %11 = arith.divf %9, %10 : vector<16x1xf32>
    %12 = math.sqrt %11 : vector<16x1xf32>
    %cst_4 = arith.constant 9.99999997E-7 : f32
    %13 = vector.broadcast %cst_4 : f32 to vector<16x1xf32>
    %14 = arith.addf %12, %13 : vector<16x1xf32>
    %cst_5 = arith.constant 1.000000e+00 : f32
    %15 = vector.broadcast %cst_5 : f32 to vector<16x1xf32>
    %16 = arith.divf %15, %14 : vector<16x1xf32>
    %c0_6 = arith.constant 0 : index
    %17 = memref.load %arg1[%c0_6] : memref<1xf32, #tpu.memory_space<smem>>
    %18 = vector.broadcast %17 : f32 to vector<16x32xf32>
    %19 = arith.mulf %18, %6 : vector<16x32xf32>
    %20 = vector.broadcast %16 : vector<16x1xf32> to vector<16x32xf32>
    %21 = arith.mulf %19, %20 : vector<16x32xf32>
    %c0_7 = arith.constant 0 : index
    %22 = memref.load %arg2[%c0_7] : memref<1xf32, #tpu.memory_space<smem>>
    %23 = vector.broadcast %22 : f32 to vector<16x32xf32>
    %24 = arith.addf %21, %23 : vector<16x32xf32>
    %c0_8 = arith.constant 0 : index
    %c0_9 = arith.constant 0 : index
    %25 = vector.load %arg4[%c0_8, %c0_9] : memref<16x32xf32, #tpu.memory_space<vmem>>, vector<16x32xf32>
    tpu.vector_store %arg4[%c0_8, %c0_9], %24 {strides = array<i32>} : memref<16x32xf32, #tpu.memory_space<vmem>>, vector<16x32xf32>,
    return
  }
  func.func @transform_0(%arg0: i32) -> i32 {
    %c0_i32 = arith.constant 0 : i32
    %c0_i32_0 = arith.constant 0 : i32
    return %c0_i32 : i32
  }
  func.func @transform_1(%arg0: i32) -> i32 {
    %c0_i32 = arith.constant 0 : i32
    %c0_i32_0 = arith.constant 0 : i32
    return %c0_i32 : i32
  }
  func.func @transform_2(%arg0: i32) -> (i32, i32) {
    %c0_i32 = arith.constant 0 : i32
    %c0_i32_0 = arith.constant 0 : i32
    return %arg0, %c0_i32 : i32, i32
  }
  func.func @transform_3(%arg0: i32) -> (i32, i32) {
    %c0_i32 = arith.constant 0 : i32
    %c0_i32_0 = arith.constant 0 : i32
    return %arg0, %c0_i32 : i32, i32
  }
}

</mosaic_0001>

<bundles_post_ra>
// kernel: tpu_custom_call.1
= control target key start
LH: loop header
LB: loop body
LE: loop exit
PB: predicated region body
PF: predicated region fallthrough
CT: control target
= control target key end

     0   :  { %10 = vsyncpa [#allocation5], 0  ;;  %s209_s0 = inlined_call_operand.<no memory space> [shape: f32[1], index: 0, kind: input, shape index: {}]   ;;  %s210_s1 = inlined_call_operand.<no memory space> [shape: f32[1], index: 1, kind: input, shape index: {}]   ;;  %s211_s2 = inlined_call_operand.hbm [shape: f32[16,32], index: 2, kind: input, shape index: {}]   ;;  %s212_s3 = inlined_call_operand.hbm [shape: f32[16,32], index: 3, kind: output, shape index: {}]  }
   0x1   :  { %11 = vsyncpa [#allocation6], 0  ;;  %s161_s12 = smov [#allocation4]  }
   0x2   :  { %s21_s13 = sshll.u32 %s161_s12, 4  ;;  %s22_s13 = int_to_ptr.vmem [resolvable:$true] %s21_s13 }
   0x3   :  { %s125_s14 = scalar_lea.vmem %s22_s13, 256  ;;  %p130_p1 = scmp.lt.s32.totalorder %s22_s13, %s22_s13 }
   0x4   :  { %p126_p0 = scmp.ne.s32.totalorder %s22_s13, %s125_s14  ;;  %p131_p2 = scmp.lt.s32.totalorder %s125_s14, %s125_s14 }
   0x6   :  { %p132_p3 = por %p131_p2, %p130_p1 }
   0x8   :  { %p133_p4 = pnand %p132_p3, %p126_p0 }
   0xa   :  { %136 = shalt.err (!%p133_p4)
}
   0xb   :  { %s162_s15 = smov 128   ;;  %s163_s16 = smov 8  }
   0xc   :  { %27 = dma.hbm_to_vmem [thread:$0]  %s211_s2, 256, %s22_s13, [#allocation5], %s162_s15, %s162_s15, %s163_s16  }
   0xd   :  { %157 = dma.done.wait [#allocation5], 256  }
   0xe   :  { %158 = vsyncadd [#allocation5], 4294967040  ;;  %vm33_vm0 = vcmask 261120   ;;  %v31_v0 = vld [vmem:[#allocation4] sm:$0xff]  ;;  %v32_v1 = vld [vmem:[#allocation4 + $0x8] sm:$0xff]  ;;  %v77_v30 = vstv %s209_s0  ;;  %v83_v33 = vstv %s210_s1  ;;  %s164_s22 = smov [#allocation7]  }
   0xf   :  { %v34_v2 = vsel %vm33_vm0, %v31_v0, 0.0  ;;  %v37_v3 = vsel %vm33_vm0, %v32_v1, 0.0  ;;  %s93_s23 = sshll.u32 %s164_s22, 4  ;;  %s94_s23 = int_to_ptr.vmem [resolvable:$true] %s93_s23 }
  0x10   :  { %35 = vadd.xlane.f32.xlu0 %v34_v2  ;;  %s137_s0 = scalar_lea.vmem %s94_s23, 256  ;;  %p142_p6 = scmp.lt.s32.totalorder %s94_s23, %s94_s23 }
  0x11   :  { %p138_p5 = scmp.ne.s32.totalorder %s94_s23, %s137_s0  ;;  %p143_p7 = scmp.lt.s32.totalorder %s137_s0, %s137_s0 }
  0x13   :  { %p144_p8 = por %p143_p7, %p142_p6 }
  0x14   :  { %38 = vadd.xlane.f32.xlu0 %v37_v3 }
  0x15   :  { %p145_p9 = pnand %p144_p8, %p138_p5 }
  0x99   :  { %v36_v4 = vpop.xlane.xlu0 %35 }
  0x9a   :  { %v41_v5 = vmul.f32 0.03125, %v36_v4 }
  0x9c   :  { %v43_v6 = vsub.f32 %v31_v0, %v41_v5 }
  0x9d   :  { %v39_v7 = vpop.xlane.xlu0 %38 }
  0x9e   :  { %v42_v8 = vmul.f32 0.03125, %v39_v7  ;;  %v45_v9 = vmul.f32 %v43_v6, %v43_v6  ;;  %v78_v31 = vmul.f32 %v77_v30, %v43_v6 }
  0xa0   :  { %v44_v10 = vsub.f32 %v32_v1, %v42_v8  ;;  %v47_v11 = vsel %vm33_vm0, %v45_v9, 0.0 }
  0xa1   :  { %48 = vadd.xlane.f32.xlu1 %v47_v11 }
  0xa2   :  { %v46_v12 = vmul.f32 %v44_v10, %v44_v10  ;;  %v79_v35 = vmul.f32 %v77_v30, %v44_v10 }
  0xa4   :  { %v50_v13 = vsel %vm33_vm0, %v46_v12, 0.0 }
  0xa5   :  { %51 = vadd.xlane.f32.xlu1 %v50_v13 }
 0x12a   :  { %v49_v14 = vpop.xlane.xlu1 %48 }
 0x12b   :  { %v54_v15 = vmul.f32 0.032258064, %v49_v14 }
 0x12d   :  { %109 = vrsqrt.f32 %v54_v15  ;;  %vm58_vm1 = vcmp.eq.f32.partialorder %v54_v15, inf  ;;  %v61_v20 = vand.u32 2147483648, %v54_v15  ;;  %vm60_vm2 = vcmp.eq.f32.partialorder %v54_v15, 0.0 }
 0x12e   :  { %v52_v16 = vpop.xlane.xlu1 %51 }
 0x12f   :  { %v55_v17 = vmul.f32 0.032258064, %v52_v16 }
 0x131   :  { %111 = vrsqrt.f32 %v55_v17  ;;  %vm65_vm3 = vcmp.eq.f32.partialorder %v55_v17, inf  ;;  %v68_v26 = vand.u32 2147483648, %v55_v17  ;;  %vm67_vm4 = vcmp.eq.f32.partialorder %v55_v17, 0.0 }
 0x13a   :  { %v110_v18 = vpop.eup %109 }
 0x13b   :  { %v57_v19 = vmul.f32 %v110_v18, %v54_v15 }
 0x13d   :  { %v59_v21 = vsel %vm58_vm1, %v54_v15, %v57_v19 }
 0x13e   :  { %v112_v22 = vpop.eup %111  ;;  %v62_v23 = vsel %vm60_vm2, %v61_v20, %v59_v21 }
 0x13f   :  { %v70_v24 = vadd.f32 1e-06, %v62_v23  ;;  %v64_v25 = vmul.f32 %v112_v22, %v55_v17 }
 0x141   :  { %113 = vrcp.f32 %v70_v24  ;;  %v66_v27 = vsel %vm65_vm3, %v55_v17, %v64_v25 }
 0x142   :  { %v69_v28 = vsel %vm67_vm4, %v68_v26, %v66_v27 }
 0x143   :  { %v71_v29 = vadd.f32 1e-06, %v69_v28 }
 0x145   :  { %115 = vrcp.f32 %v71_v29 }
 0x14e   :  { %v114_v32 = vpop.eup %113 }
 0x14f   :  { %v80_v34 = vmul.f32 %v114_v32, %v78_v31 }
 0x151   :  { %v84_v36 = vadd.f32 %v83_v33, %v80_v34 }
 0x152   :  { %v116_v37 = vpop.eup %115 }
 0x153   :  { %v81_v38 = vmul.f32 %v116_v37, %v79_v35  ;;  %86 = vst.msk [vmem:[#allocation7] sm:$0xff] %vm33_vm0, %v84_v36 }
 0x155   :  { %v85_v39 = vadd.f32 %v83_v33, %v81_v38 }
 0x157   :  { %87 = vst.msk [vmem:[#allocation7 + $0x8] sm:$0xff] %vm33_vm0, %v85_v39 }
 0x158   :  { %148 = shalt.err (!%p145_p9)
}
 0x159   :  { %99 = dma.vmem_to_hbm [thread:$0]  %s94_s23, 256, %s212_s3, [#allocation6], %s162_s15, %s162_s15, %s163_s16  }
 0x15a   :  { %159 = dma.done.wait [#allocation6], 256  }
 0x15b   :  { %160 = vsyncadd [#allocation6], 4294967040 }
 0x15c   :  { %103 = vsyncpa [#allocation5], 1 }
 0x15d   :  { %104 = vsyncpa [#allocation6], 1 }

</bundles_post_ra>
